<compile_context>
chip_gen: v5e
topology: v5e:2x2
jax: 0.10.0
libtpu: 0.0.40
codegen_flags: <defaults>
</compile_context>

<pallas_src>
import jax
import jax.numpy as jnp
from jax.experimental import pallas as pl
from jax.experimental.pallas import tpu as pltpu


def full_mlp_dqn_kernel(x_ref, w_ref, b_ref, o_ref):
    # x_ref: (bb, D) native dtype; w_ref: (O, D); b_ref: (1, O) f32; o_ref: (bb, O) f32
    x = x_ref[...].astype(jnp.float32)

    # Linear layer on the MXU, contracting the feature dim of both operands
    # (equivalent to x @ W.T without materializing a transposed weight).
    y = jax.lax.dot_general(
        x,
        w_ref[...].astype(jnp.float32),
        dimension_numbers=(((1,), (1,)), ((), ())),
        preferred_element_type=jnp.float32,
    )  # (bb, O)

    # Row-wise L2 normalization folded into a post-matmul scale.
    sq_sum = jnp.sum(x * x, axis=1, keepdims=True)                     # (bb, 1)
    inv_norm = jax.lax.rsqrt(jnp.maximum(sq_sum, jnp.float32(1e-24)))  # EUP rsqrt

    o_ref[...] = y * inv_norm + b_ref[...]


def full_mlp_dqn_forward(x, weight, bias, *, block_b=512):
    """x: (B, D) float; weight: (O, D); bias: (O,). Returns (B, O) float32."""
    B, D = x.shape
    O = weight.shape[0]

    # Batch tile: whole batch when small, otherwise a sublane-aligned tile.
    if B <= block_b:
        bb = B
    else:
        bb = max(8, (block_b // 8) * 8)
    grid = (pl.cdiv(B, bb),)

    b2d = bias.astype(jnp.float32).reshape(1, O)

    bytes_accessed = (x.size * x.dtype.itemsize
                      + weight.size * weight.dtype.itemsize
                      + b2d.size * 4
                      + B * O * 4)
    cost = pl.CostEstimate(
        flops=2 * B * D * O + 3 * B * D + 2 * B * O,
        transcendentals=B,
        bytes_accessed=bytes_accessed,
    )

    return pl.pallas_call(
        full_mlp_dqn_kernel,
        out_shape=jax.ShapeDtypeStruct((B, O), jnp.float32),
        grid=grid,
        in_specs=[
            pl.BlockSpec((bb, D), lambda i: (i, 0)),   # streamed batch tile
            pl.BlockSpec((O, D), lambda i: (0, 0)),    # weight, resident
            pl.BlockSpec((1, O), lambda i: (0, 0)),    # bias, resident
        ],
        out_specs=pl.BlockSpec((bb, O), lambda i: (i, 0)),
        compiler_params=pltpu.CompilerParams(
            dimension_semantics=("parallel",),
        ),
        cost_estimate=cost,
    )(x, weight, b2d)


if __name__ == "__main__":
    # Module hyper-parameters (small, consistent with __init__).
    num_customers = 4
    num_dcs = 4
    num_commodities = 3
    input_size = (
        num_dcs                      # mask
        + num_customers              # onehot
        + num_commodities * num_dcs  # inventory
        + num_commodities            # demand
        + num_commodities            # backlog
        + num_dcs                    # inventory_after_current_order
    )                                # = 30

    key = jax.random.PRNGKey(0)
    kx, kw, kb, kx2 = jax.random.split(key, 4)

    # Deterministic nn.Linear-like init: uniform(-1/sqrt(D), 1/sqrt(D)).
    bound = 1.0 / (input_size ** 0.5)
    weight = jax.random.uniform(kw, (num_dcs, input_size),
                                minval=-bound, maxval=bound, dtype=jnp.float32)
    bias = jax.random.uniform(kb, (num_dcs,),
                              minval=-bound, maxval=bound, dtype=jnp.float32)

    def reference(xin):
        xf = xin.astype(jnp.float32)
        denom = jnp.maximum(jnp.linalg.norm(xf, axis=1, keepdims=True), 1e-12)
        return (xf / denom) @ weight.T + bias

    # Small case consistent with the module (single grid step).
    batch = 2
    x = jax.random.normal(kx, (batch, input_size), dtype=jnp.float32)
    out = full_mlp_dqn_forward(x, weight, bias)
    jax.block_until_ready(out)
    assert out.shape == (batch, num_dcs)
    assert jnp.allclose(out, reference(x), atol=1e-5, rtol=1e-5)

    # Multi-block case exercising the batch grid (incl. a partial last block).
    batch2 = 200
    x2 = jax.random.normal(kx2, (batch2, input_size), dtype=jnp.float32)
    out2 = full_mlp_dqn_forward(x2, weight, bias, block_b=64)
    jax.block_until_ready(out2)
    assert out2.shape == (batch2, num_dcs)
    assert jnp.allclose(out2, reference(x2), atol=1e-5, rtol=1e-5)

    print("KERNEL_OK")
</pallas_src>

<mosaic_0001>
module attributes {stable_mosaic.version = 11 : i64} {
  func.func @full_mlp_dqn_kernel(%arg0: i32, %arg1: memref<2x30xf32, #tpu.memory_space<vmem>>, %arg2: memref<4x30xf32, #tpu.memory_space<vmem>>, %arg3: memref<1x4xf32, #tpu.memory_space<vmem>>, %arg4: memref<2x4xf32, #tpu.memory_space<vmem>>) attributes {dimension_semantics = [#tpu.dimension_semantics<parallel>], iteration_bounds = array<i64: 1>, scalar_prefetch = 0 : i64, scratch_operands = 0 : i64, tpu.core_type = #tpu.core_type<tc>, window_params = [{transform_indices = @transform_0, window_bounds = array<i64: 2, 30>}, {pipeline_mode = #tpu.pipeline_mode<synchronous>, transform_indices = @transform_1, window_bounds = array<i64: 4, 30>}, {pipeline_mode = #tpu.pipeline_mode<synchronous>, transform_indices = @transform_2, window_bounds = array<i64: 1, 4>}, {transform_indices = @transform_3, window_bounds = array<i64: 2, 4>}]} {
    %c0 = arith.constant 0 : index
    %c0_0 = arith.constant 0 : index
    %0 = vector.load %arg1[%c0, %c0_0] : memref<2x30xf32, #tpu.memory_space<vmem>>, vector<2x30xf32>
    %c0_1 = arith.constant 0 : index
    %c0_2 = arith.constant 0 : index
    %1 = vector.load %arg2[%c0_1, %c0_2] : memref<4x30xf32, #tpu.memory_space<vmem>>, vector<4x30xf32>
    %cst = arith.constant dense<0.000000e+00> : vector<2x4xf32>
    %2 = tpu.matmul %0, %1, %cst {dimension_numbers = #tpu.dot_dimension_numbers<[1], [1], [0], [0], [0, 0, 1, 0], [], []>} : vector<2x30xf32>, vector<4x30xf32>, vector<2x4xf32> -> vector<2x4xf32>
    %3 = arith.mulf %0, %0 : vector<2x30xf32>
    %cst_3 = arith.constant dense<0.000000e+00> : vector<2xf32>
    %4 = vector.multi_reduction <add>, %3, %cst_3 [1] : vector<2x30xf32> to vector<2xf32>
    %5 = vector.shape_cast %4 : vector<2xf32> to vector<2x1xf32>
    %cst_4 = arith.constant 1.000000e-24 : f32
    %6 = vector.broadcast %cst_4 : f32 to vector<2x1xf32>
    %7 = arith.maximumf %5, %6 : vector<2x1xf32>
    %8 = math.rsqrt %7 : vector<2x1xf32>
    %9 = vector.broadcast %8 : vector<2x1xf32> to vector<2x4xf32>
    %10 = arith.mulf %2, %9 : vector<2x4xf32>
    %c0_5 = arith.constant 0 : index
    %c0_6 = arith.constant 0 : index
    %11 = vector.load %arg3[%c0_5, %c0_6] : memref<1x4xf32, #tpu.memory_space<vmem>>, vector<1x4xf32>
    %12 = vector.broadcast %11 : vector<1x4xf32> to vector<2x4xf32>
    %13 = arith.addf %10, %12 : vector<2x4xf32>
    %c0_7 = arith.constant 0 : index
    %c0_8 = arith.constant 0 : index
    %14 = vector.load %arg4[%c0_7, %c0_8] : memref<2x4xf32, #tpu.memory_space<vmem>>, vector<2x4xf32>
    tpu.vector_store %arg4[%c0_7, %c0_8], %13 {strides = array<i32>} : memref<2x4xf32, #tpu.memory_space<vmem>>, vector<2x4xf32>,
    return
  }
  func.func @transform_0(%arg0: i32) -> (i32, i32) {
    %c0_i32 = arith.constant 0 : i32
    %c0_i32_0 = arith.constant 0 : i32
    return %arg0, %c0_i32 : i32, i32
  }
  func.func @transform_1(%arg0: i32) -> (i32, i32) {
    %c0_i32 = arith.constant 0 : i32
    %c0_i32_0 = arith.constant 0 : i32
    %c0_i32_1 = arith.constant 0 : i32
    return %c0_i32, %c0_i32_0 : i32, i32
  }
  func.func @transform_2(%arg0: i32) -> (i32, i32) {
    %c0_i32 = arith.constant 0 : i32
    %c0_i32_0 = arith.constant 0 : i32
    %c0_i32_1 = arith.constant 0 : i32
    return %c0_i32, %c0_i32_0 : i32, i32
  }
  func.func @transform_3(%arg0: i32) -> (i32, i32) {
    %c0_i32 = arith.constant 0 : i32
    %c0_i32_0 = arith.constant 0 : i32
    return %arg0, %c0_i32 : i32, i32
  }
}

</mosaic_0001>

<bundles_post_ra>
// kernel: tpu_custom_call.1
= control target key start
LH: loop header
LB: loop body
LE: loop exit
PB: predicated region body
PF: predicated region fallthrough
CT: control target
= control target key end

     0   :  { %8 = vsyncpa [#allocation3], 0  ;;  %s235_s0 = inlined_call_operand.hbm [shape: f32[2,30], index: 0, kind: input, shape index: {}]   ;;  %s236_s1 = inlined_call_operand.hbm [shape: f32[4,30], index: 1, kind: input, shape index: {}]   ;;  %s237_s2 = inlined_call_operand.vmem [shape: f32[1,4], index: 2, kind: input, shape index: {}]   ;;  %s238_s3 = inlined_call_operand.hbm [shape: f32[2,4], index: 3, kind: output, shape index: {}]  }
   0x1   :  { %9 = vsyncpa [#allocation6], 0 }
   0x2   :  { %10 = vsyncpa [#allocation4], 0  ;;  %s16_s14 = sshll.u32 %s235_s0, 4  ;;  %s200_s15 = smov [#allocation2]   ;;  %s17_s14 = int_to_ptr.hbm [resolvable:$true] %s16_s14 }
   0x3   :  { %s18_s16 = sshll.u32 %s200_s15, 4  ;;  %s27_s19 = sshll.u32 %s236_s1, 4  ;;  %s19_s16 = int_to_ptr.vmem [resolvable:$true] %s18_s16  ;;  %s28_s19 = int_to_ptr.hbm [resolvable:$true] %s27_s19 }
   0x4   :  { %21 = dma.hbm_to_vmem [thread:$0]  %s17_s14, 32, %s19_s16, [#allocation3]  }
   0x5   :  { %s201_s20 = smov [#allocation5]  }
   0x6   :  { %s29_s21 = sshll.u32 %s201_s20, 4  ;;  %s30_s21 = int_to_ptr.vmem [resolvable:$true] %s29_s21 }
   0x7   :  { %32 = dma.hbm_to_vmem [thread:$0]  %s28_s19, 64, %s30_s21, [#allocation6]  }
   0x8   :  { %194 = dma.done.wait [#allocation3], 32  }
   0x9   :  { %195 = vsyncadd [#allocation3], 4294967264 }
   0xa   :  { %196 = dma.done.wait [#allocation6], 64  }
   0xb   :  { %197 = vsyncadd [#allocation6], 4294967232  ;;  %vm45_vm0 = vcmask 244736   ;;  %vm73_vm1 = vcmask 238592   ;;  %v43_v0 = vld [vmem:[#allocation2] sm:$0x3] }
   0xc   :  { %v44_v1 = vld [vmem:[#allocation5] sm:$0xf]  ;;  %v72_v2 = vmul.f32 %v43_v0, %v43_v0  ;;  %v119_v13 = vld [vmem:[%s237_s2] ss:$0 sm:$0xff]  ;;  %s202_s22 = smov [#allocation7]   ;;  %s103_s26 = sshll.u32 %s238_s3, 4  ;;  %s104_s26 = int_to_ptr.hbm [resolvable:$true] %s103_s26 }
   0xd   :  { %114 = vmatpush.xpose.msk.msra.mxu0 %vm45_vm0, %v44_v1  ;;  %s101_s23 = sshll.u32 %s202_s22, 4  ;;  %vm94_vm5 = vcmask 25600   ;;  %s102_s23 = int_to_ptr.vmem [resolvable:$true] %s101_s23 }
   0xe   :  { %v74_v3 = vsel %vm73_vm1, %v72_v2, 0.0 }
   0xf   :  { %75 = vadd.xlane.f32.xlu0 %v74_v3 }
  0x10   :  { %115 = vmatmul.msk.f32.vlgmr.msra.gmra.mxu0 %vm45_vm0, %v43_v0 }
  0x82   :  { %v76_v4 = vpop.xlane.xlu0 %75 }
  0x83   :  { %v77_v5 = vmax.f32 %v76_v4, 1e-24 }
  0x85   :  { %120 = vrsqrt.f32 %v77_v5  ;;  %vm84_vm3 = vweird.f32 %v77_v5 }
  0x8b   :  { %v121_v6 = vpop.eup %120 }
  0x8c   :  { %v79_v7 = vmul.f32 %v121_v6, %v77_v5  ;;  %vm85_vm2 = vweird.f32 %v121_v6 }
  0x8d   :  { %v69_v11 = vpop.f32.mrf.mxu0  ;;  %vm86_vm4 = vmor %vm84_vm3, %vm85_vm2 }
  0x8e   :  { %v80_v8 = vmul.f32 %v121_v6, %v79_v7 }
  0x90   :  { %v81_v9 = vmul.f32 0.5, %v80_v8 }
  0x92   :  { %v82_v10 = vsub.f32 1.5, %v81_v9 }
  0x94   :  { %v83_v12 = vmul.f32 %v121_v6, %v82_v10 }
  0x96   :  { %v87_v14 = vsel %vm86_vm4, %v121_v6, %v83_v12 }
  0x97   :  { %v88_v15 = vmul.f32 %v87_v14, %v69_v11 }
  0x99   :  { %v93_v16 = vadd.f32 %v119_v13, %v88_v15 }
  0x9b   :  { %95 = vst.msk [vmem:[#allocation7] sm:$0x3] %vm94_vm5, %v93_v16 }
  0x9c   :  { %106 = dma.vmem_to_hbm [thread:$0]  %s102_s23, 32, %s104_s26, [#allocation4]  }
  0x9d   :  { %198 = dma.done.wait [#allocation4], 32  }
  0x9e   :  { %199 = vsyncadd [#allocation4], 4294967264 }
  0x9f   :  { %111 = vsyncpa [#allocation3], 1 }
  0xa0   :  { %112 = vsyncpa [#allocation6], 1 }
  0xa1   :  { %113 = vsyncpa [#allocation4], 1 }

</bundles_post_ra>
